<compile_context>
chip_gen: v7x
topology: tpu7x:2x2x1
jax: 0.10.0
libtpu: 0.0.40
codegen_flags: <defaults>
</compile_context>

<pallas_src>
from functools import partial

import jax
import jax.numpy as jnp
from jax import lax
from jax.experimental import pallas as pl
from jax.experimental.pallas import tpu as pltpu

LANES = 128
SUBLANES = 8
# 4096 rows x 128 lanes f32 = 2 MiB per input block; 2 inputs x 2 pipeline
# buffers = 8 MiB VMEM -> fits v5e/v6e (128 MiB) and v7x (64 MiB) with room.
DEFAULT_MAX_BLOCK_ROWS = 4096
# Compute strip size (rows) inside the kernel; temporaries are (256,128) f32.
DEFAULT_STRIP_ROWS = 256


def _sigmoid_bce_terms(x, t):
    """tanh-form sigmoid + numerically stable with-logits BCE (f32 in/out)."""
    th = jnp.tanh(0.5 * x)              # EUP tanh
    h = 0.5 * th
    sig = 0.5 + h                       # sigmoid(x)
    # log(1 + exp(-|x|)) == -log(sigmoid(|x|)) == -log(0.5 + 0.5*|tanh(x/2)|)
    bce = jnp.maximum(x, 0.0) - x * t - jnp.log(0.5 + jnp.abs(h))
    return sig, bce


def _dice_bce_kernel(x_ref, t_ref, out_ref, *, block_rows, strip_rows,
                     chunk_rows, needs_mask):
    """Accumulates partial sums into the resident (4, 8, 128) output block.

    out_ref rows: [0] sum(sigmoid(x)*t)  [1] sum(sigmoid(x))
                  [2] sum(t)             [3] sum(per-element BCE)
    """
    i = pl.program_id(1)                # streaming step (reduction axis)

    @pl.when(i == 0)
    def _():
        out_ref[...] = jnp.zeros_like(out_ref)

    n_strips = block_rows // strip_rows

    def accumulate(masked):
        def fold8(a):                   # (strip_rows,128) -> (8,128), VPU adds
            return a.reshape(strip_rows // SUBLANES, SUBLANES, LANES).sum(axis=0)

        def body(s, carry):
            a_int, a_sig, a_tgt, a_bce = carry
            base = s * strip_rows
            if not isinstance(base, int):
                base = pl.multiple_of(base, strip_rows)
            x = x_ref[pl.ds(base, strip_rows), :].astype(jnp.float32)
            t = t_ref[pl.ds(base, strip_rows), :].astype(jnp.float32)
            sig, bce = _sigmoid_bce_terms(x, t)
            if masked:
                # Row-level bound (no element-index int32 overflow risk).
                row = (i * block_rows + base
                       + lax.broadcasted_iota(jnp.int32, (strip_rows, LANES), 0))
                valid = row < chunk_rows
                sig = jnp.where(valid, sig, 0.0)
                t = jnp.where(valid, t, 0.0)
                bce = jnp.where(valid, bce, 0.0)
            return (a_int + fold8(sig * t), a_sig + fold8(sig),
                    a_tgt + fold8(t), a_bce + fold8(bce))

        z = jnp.zeros((SUBLANES, LANES), jnp.float32)
        a_int, a_sig, a_tgt, a_bce = lax.fori_loop(
            0, n_strips, body, (z, z, z, z), unroll=True)
        out_ref[0] += a_int
        out_ref[1] += a_sig
        out_ref[2] += a_tgt
        out_ref[3] += a_bce

    if needs_mask:
        # Only the last step of a chunk can be ragged; every other step keeps
        # the mask-free fast path.
        ragged = (i + 1) * block_rows > chunk_rows

        @pl.when(jnp.logical_not(ragged))
        def _():
            accumulate(False)

        @pl.when(ragged)
        def _():
            accumulate(True)
    else:
        accumulate(False)


def _partial_sums_jax(x, t):
    """Plain-JAX partial sums (used for the unaligned tail / tiny inputs)."""
    x = x.astype(jnp.float32)
    t = t.astype(jnp.float32)
    sig, bce = _sigmoid_bce_terms(x, t)
    return jnp.sum(sig * t), jnp.sum(sig), jnp.sum(t), jnp.sum(bce)


def dice_bce_loss(inputs, targets, smooth=1.0,
                  max_block_rows=DEFAULT_MAX_BLOCK_ROWS,
                  strip_rows=DEFAULT_STRIP_ROWS):
    """Pallas equivalent of DiceBCELoss.forward(inputs, targets, smooth)."""
    assert max_block_rows % SUBLANES == 0 and max_block_rows >= SUBLANES
    assert strip_rows % SUBLANES == 0

    x = inputs.reshape(-1)              # keep native dtype; cast in-kernel
    t = targets.reshape(-1)
    total = x.shape[0]

    tile = SUBLANES * LANES
    aligned = (total // tile) * tile
    rem = total - aligned

    if aligned == 0:
        # Tiny input: no kernel launch needed.
        inter, sum_s, sum_t, sum_bce = _partial_sums_jax(x, t)
    else:
        # Stream only the aligned prefix (no full-array jnp.pad); the <=1023
        # element tail is handled by the JAX epilogue below.
        xk = x if rem == 0 else x[:aligned]
        tk = t if rem == 0 else t[:aligned]
        rows = aligned // LANES                           # multiple of 8

        # Outer "parallel" chunk axis: only split when each chunk still gets
        # at least two full-size blocks (pure overhead otherwise on 1-TC
        # chips); on v7x this lets both TensorCores stream half the data.
        num_chunks = 2 if (rows % (2 * SUBLANES) == 0
                           and rows // 2 >= 2 * max_block_rows) else 1
        chunk_rows = rows // num_chunks                   # multiple of 8

        # Block rows: as large as allowed, aligned to the dtype's sublane
        # packing (8 rows f32, 16 bf16, 32 int8/fp8) and to the strip size.
        x_size = jnp.dtype(x.dtype).itemsize
        t_size = jnp.dtype(t.dtype).itemsize
        packing = SUBLANES * max(1, 4 // x_size)
        block_rows = min(max_block_rows, chunk_rows)
        if block_rows >= packing:
            block_rows -= block_rows % packing
        if block_rows > strip_rows:
            block_rows -= block_rows % strip_rows
            strip = strip_rows
        else:
            strip = block_rows
        inner = pl.cdiv(chunk_rows, block_rows)
        needs_mask = (inner * block_rows != chunk_rows)

        x3 = xk.reshape(num_chunks, chunk_rows, LANES)    # free (bitcast)
        t3 = tk.reshape(num_chunks, chunk_rows, LANES)

        in_spec = pl.BlockSpec((None, block_rows, LANES), lambda o, i: (o, i, 0))
        out_spec = pl.BlockSpec((None, 4, SUBLANES, LANES),
                                lambda o, i: (o, 0, 0, 0))

        n_elems = rows * LANES
        cost = pl.CostEstimate(
            flops=15 * n_elems,
            transcendentals=2 * n_elems,
            bytes_accessed=n_elems * (x_size + t_size)
            + num_chunks * 4 * SUBLANES * LANES * 4)

        # 2 pipeline buffers per input; leave headroom, cap well under v7x's
        # 64 MiB physical VMEM.
        pipeline_bytes = 2 * block_rows * LANES * (x_size + t_size)
        vmem_limit = int(min(48 << 20,
                             max(16 << 20, 2 * pipeline_bytes + (4 << 20))))

        partials = pl.pallas_call(
            partial(_dice_bce_kernel, block_rows=block_rows, strip_rows=strip,
                    chunk_rows=chunk_rows, needs_mask=needs_mask),
            out_shape=jax.ShapeDtypeStruct((num_chunks, 4, SUBLANES, LANES),
                                           jnp.float32),
            grid_spec=pltpu.PrefetchScalarGridSpec(
                num_scalar_prefetch=0,
                grid=(num_chunks, inner),
                in_specs=[in_spec, in_spec],
                out_specs=out_spec,
            ),
            compiler_params=pltpu.CompilerParams(
                dimension_semantics=("parallel", "arbitrary"),
                vmem_limit_bytes=vmem_limit),
            cost_estimate=cost,
        )(x3, t3)

        sums = jnp.sum(partials, axis=(0, 2, 3))
        inter, sum_s, sum_t, sum_bce = sums[0], sums[1], sums[2], sums[3]
        if rem:
            ti_, ts_, tt_, tb_ = _partial_sums_jax(x[aligned:], t[aligned:])
            inter = inter + ti_
            sum_s = sum_s + ts_
            sum_t = sum_t + tt_
            sum_bce = sum_bce + tb_

    dice_loss = 1.0 - (2.0 * inter + smooth) / (sum_s + sum_t + smooth)
    bce = sum_bce / total
    return bce + dice_loss


def dice_bce_loss_ref(inputs, targets, smooth=1.0):
    """Plain-JAX reference mirroring the PyTorch module."""
    s = jax.nn.sigmoid(inputs.astype(jnp.float32)).reshape(-1)
    t = targets.astype(jnp.float32).reshape(-1)
    inter = jnp.sum(s * t)
    dice_loss = 1.0 - (2.0 * inter + smooth) / (jnp.sum(s) + jnp.sum(t) + smooth)
    bce = jnp.mean(-(t * jnp.log(s) + (1.0 - t) * jnp.log(1.0 - s)))
    return bce + dice_loss


if __name__ == "__main__":
    key = jax.random.PRNGKey(0)
    k1, k2 = jax.random.split(key)

    # Primary case: NCHW logits and binary targets (small shapes).
    B, C, H, W = 2, 4, 16, 16
    inputs = jax.random.normal(k1, (B, C, H, W), dtype=jnp.float32)
    targets = (jax.random.uniform(k2, (B, C, H, W)) > 0.5).astype(jnp.float32)

    out = jax.block_until_ready(dice_bce_loss(inputs, targets, smooth=1.0))
    ref = jax.block_until_ready(dice_bce_loss_ref(inputs, targets, smooth=1.0))
    assert jnp.allclose(out, ref, rtol=1e-5, atol=5e-5), (out, ref)

    # bf16 inputs + plain-JAX tail epilogue (total not a multiple of 1024).
    ka, kb = jax.random.split(jax.random.PRNGKey(1))
    xi = jax.random.normal(ka, (2, 3, 17, 19), dtype=jnp.bfloat16)
    ti = (jax.random.uniform(kb, (2, 3, 17, 19)) > 0.5).astype(jnp.bfloat16)
    o2 = jax.block_until_ready(dice_bce_loss(xi, ti, smooth=1.0,
                                             max_block_rows=8))
    r2 = jax.block_until_ready(dice_bce_loss_ref(xi, ti, smooth=1.0))
    assert jnp.allclose(o2, r2, rtol=1e-4, atol=1e-4), (o2, r2)

    # bf16, multi-step accumulation with a ragged (masked) last block.
    kc, kd = jax.random.split(jax.random.PRNGKey(2))
    xj = jax.random.normal(kc, (1, 1, 40, 128), dtype=jnp.bfloat16)
    tj = (jax.random.uniform(kd, (1, 1, 40, 128)) > 0.5).astype(jnp.bfloat16)
    o3 = jax.block_until_ready(dice_bce_loss(xj, tj, smooth=1.0,
                                             max_block_rows=16))
    r3 = jax.block_until_ready(dice_bce_loss_ref(xj, tj, smooth=1.0))
    assert jnp.allclose(o3, r3, rtol=1e-4, atol=1e-4), (o3, r3)

    # f32, exercises the unrolled strip loop (n_strips>1) and inner>1.
    ke, kf = jax.random.split(jax.random.PRNGKey(3))
    xk_ = jax.random.normal(ke, (2, 8, 64, 128), dtype=jnp.float32)
    tk_ = (jax.random.uniform(kf, (2, 8, 64, 128)) > 0.5).astype(jnp.float32)
    o4 = jax.block_until_ready(dice_bce_loss(xk_, tk_, smooth=1.0,
                                             max_block_rows=512))
    r4 = jax.block_until_ready(dice_bce_loss_ref(xk_, tk_, smooth=1.0))
    assert jnp.allclose(o4, r4, rtol=1e-4, atol=1e-4), (o4, r4)

    # Same data through the 2-chunk ("parallel" outer axis) path.
    o5 = jax.block_until_ready(dice_bce_loss(xk_, tk_, smooth=1.0,
                                             max_block_rows=64))
    assert jnp.allclose(o5, r4, rtol=1e-4, atol=1e-4), (o5, r4)

    print("KERNEL_OK")
</pallas_src>

<mosaic_0001>
module attributes {stable_mosaic.version = 11 : i64} {
  func.func @_dice_bce_kernel(%arg0: i32, %arg1: i32, %arg2: memref<1x16x128xf32, #tpu.memory_space<vmem>>, %arg3: memref<1x16x128xf32, #tpu.memory_space<vmem>>, %arg4: memref<1x4x8x128xf32, #tpu.memory_space<vmem>>) attributes {dimension_semantics = [#tpu.dimension_semantics<parallel>, #tpu.dimension_semantics<arbitrary>], iteration_bounds = array<i64: 1, 1>, scalar_prefetch = 0 : i64, scratch_operands = 0 : i64, tpu.core_type = #tpu.core_type<tc>, window_params = [{transform_indices = @transform_0, window_bounds = array<i64: 1, 16, 128>}, {transform_indices = @transform_1, window_bounds = array<i64: 1, 16, 128>}, {transform_indices = @transform_2, window_bounds = array<i64: 1, 4, 8, 128>}]} {
    %c0_i32 = arith.constant 0 : i32
    %0 = arith.cmpi eq, %arg1, %c0_i32 : i32
    %1 = arith.extui %0 : i1 to i32
    %c0_i32_0 = arith.constant 0 : i32
    %2 = arith.cmpi ne, %1, %c0_i32_0 : i32
    scf.if %2 {
      %cst_43 = arith.constant 0.000000e+00 : f32
      %65 = vector.broadcast %cst_43 : f32 to vector<4x8x128xf32>
      %c0_44 = arith.constant 0 : index
      %c0_45 = arith.constant 0 : index
      %c0_46 = arith.constant 0 : index
      %c0_47 = arith.constant 0 : index
      %66 = vector.load %arg4[%c0_44, %c0_45, %c0_46, %c0_47] : memref<1x4x8x128xf32, #tpu.memory_space<vmem>>, vector<1x4x8x128xf32>
      %67 = vector.shape_cast %66 : vector<1x4x8x128xf32> to vector<4x8x128xf32>
      %68 = vector.shape_cast %65 : vector<4x8x128xf32> to vector<1x4x8x128xf32>
      tpu.vector_store %arg4[%c0_44, %c0_45, %c0_46, %c0_47], %68 {strides = array<i32>} : memref<1x4x8x128xf32, #tpu.memory_space<vmem>>, vector<1x4x8x128xf32>,
    } else {
    }
    %cst = arith.constant 0.000000e+00 : f32
    %3 = vector.broadcast %cst : f32 to vector<8x128xf32>
    %c0_i32_1 = arith.constant 0 : i32
    %c16_i32 = arith.constant 16 : i32
    %4 = arith.muli %c0_i32_1, %c16_i32 : i32
    %5 = tpu.assume_multiple %4, 16 : i32
    %c0 = arith.constant 0 : index
    %6 = arith.index_cast %5 : i32 to index
    %c0_2 = arith.constant 0 : index
    %7 = vector.load %arg2[%c0, %6, %c0_2] : memref<1x16x128xf32, #tpu.memory_space<vmem>>, vector<1x16x128xf32>
    %8 = vector.shape_cast %7 : vector<1x16x128xf32> to vector<16x128xf32>
    %c0_3 = arith.constant 0 : index
    %9 = arith.index_cast %5 : i32 to index
    %c0_4 = arith.constant 0 : index
    %10 = vector.load %arg3[%c0_3, %9, %c0_4] : memref<1x16x128xf32, #tpu.memory_space<vmem>>, vector<1x16x128xf32>
    %11 = vector.shape_cast %10 : vector<1x16x128xf32> to vector<16x128xf32>
    %cst_5 = arith.constant 5.000000e-01 : f32
    %12 = vector.broadcast %cst_5 : f32 to vector<16x128xf32>
    %13 = arith.mulf %12, %8 : vector<16x128xf32>
    %14 = math.tanh %13 : vector<16x128xf32>
    %cst_6 = arith.constant 5.000000e-01 : f32
    %15 = vector.broadcast %cst_6 : f32 to vector<16x128xf32>
    %16 = arith.mulf %15, %14 : vector<16x128xf32>
    %cst_7 = arith.constant 5.000000e-01 : f32
    %17 = vector.broadcast %cst_7 : f32 to vector<16x128xf32>
    %18 = arith.addf %17, %16 : vector<16x128xf32>
    %cst_8 = arith.constant 0.000000e+00 : f32
    %19 = vector.broadcast %cst_8 : f32 to vector<16x128xf32>
    %20 = arith.maximumf %8, %19 : vector<16x128xf32>
    %21 = arith.mulf %8, %11 : vector<16x128xf32>
    %22 = arith.subf %20, %21 : vector<16x128xf32>
    %23 = math.absf %16 : vector<16x128xf32>
    %cst_9 = arith.constant 5.000000e-01 : f32
    %24 = vector.broadcast %cst_9 : f32 to vector<16x128xf32>
    %25 = arith.addf %24, %23 : vector<16x128xf32>
    %26 = math.log %25 : vector<16x128xf32>
    %27 = arith.subf %22, %26 : vector<16x128xf32>
    %28 = arith.mulf %18, %11 : vector<16x128xf32>
    %29 = vector.shape_cast %28 : vector<16x128xf32> to vector<2x8x128xf32>
    %cst_10 = arith.constant dense<0.000000e+00> : vector<8x128xf32>
    %30 = vector.multi_reduction <add>, %29, %cst_10 [0] : vector<2x8x128xf32> to vector<8x128xf32>
    %31 = arith.addf %3, %30 : vector<8x128xf32>
    %32 = vector.shape_cast %18 : vector<16x128xf32> to vector<2x8x128xf32>
    %cst_11 = arith.constant dense<0.000000e+00> : vector<8x128xf32>
    %33 = vector.multi_reduction <add>, %32, %cst_11 [0] : vector<2x8x128xf32> to vector<8x128xf32>
    %34 = arith.addf %3, %33 : vector<8x128xf32>
    %35 = vector.shape_cast %11 : vector<16x128xf32> to vector<2x8x128xf32>
    %cst_12 = arith.constant dense<0.000000e+00> : vector<8x128xf32>
    %36 = vector.multi_reduction <add>, %35, %cst_12 [0] : vector<2x8x128xf32> to vector<8x128xf32>
    %37 = arith.addf %3, %36 : vector<8x128xf32>
    %38 = vector.shape_cast %27 : vector<16x128xf32> to vector<2x8x128xf32>
    %cst_13 = arith.constant dense<0.000000e+00> : vector<8x128xf32>
    %39 = vector.multi_reduction <add>, %38, %cst_13 [0] : vector<2x8x128xf32> to vector<8x128xf32>
    %40 = arith.addf %3, %39 : vector<8x128xf32>
    %c1_i32 = arith.constant 1 : i32
    %c0_14 = arith.constant 0 : index
    %c0_15 = arith.constant 0 : index
    %c0_16 = arith.constant 0 : index
    %c0_17 = arith.constant 0 : index
    %41 = vector.load %arg4[%c0_14, %c0_15, %c0_16, %c0_17] : memref<1x4x8x128xf32, #tpu.memory_space<vmem>>, vector<1x1x8x128xf32>
    %42 = vector.shape_cast %41 : vector<1x1x8x128xf32> to vector<8x128xf32>
    %43 = arith.addf %42, %31 : vector<8x128xf32>
    %c0_18 = arith.constant 0 : index
    %c0_19 = arith.constant 0 : index
    %c0_20 = arith.constant 0 : index
    %c0_21 = arith.constant 0 : index
    %44 = vector.load %arg4[%c0_18, %c0_19, %c0_20, %c0_21] : memref<1x4x8x128xf32, #tpu.memory_space<vmem>>, vector<1x1x8x128xf32>
    %45 = vector.shape_cast %44 : vector<1x1x8x128xf32> to vector<8x128xf32>
    %46 = vector.shape_cast %43 : vector<8x128xf32> to vector<1x1x8x128xf32>
    tpu.vector_store %arg4[%c0_18, %c0_19, %c0_20, %c0_21], %46 {strides = array<i32>} : memref<1x4x8x128xf32, #tpu.memory_space<vmem>>, vector<1x1x8x128xf32>,
    %c0_22 = arith.constant 0 : index
    %c1 = arith.constant 1 : index
    %c0_23 = arith.constant 0 : index
    %c0_24 = arith.constant 0 : index
    %47 = vector.load %arg4[%c0_22, %c1, %c0_23, %c0_24] : memref<1x4x8x128xf32, #tpu.memory_space<vmem>>, vector<1x1x8x128xf32>
    %48 = vector.shape_cast %47 : vector<1x1x8x128xf32> to vector<8x128xf32>
    %49 = arith.addf %48, %34 : vector<8x128xf32>
    %c0_25 = arith.constant 0 : index
    %c1_26 = arith.constant 1 : index
    %c0_27 = arith.constant 0 : index
    %c0_28 = arith.constant 0 : index
    %50 = vector.load %arg4[%c0_25, %c1_26, %c0_27, %c0_28] : memref<1x4x8x128xf32, #tpu.memory_space<vmem>>, vector<1x1x8x128xf32>
    %51 = vector.shape_cast %50 : vector<1x1x8x128xf32> to vector<8x128xf32>
    %52 = vector.shape_cast %49 : vector<8x128xf32> to vector<1x1x8x128xf32>
    tpu.vector_store %arg4[%c0_25, %c1_26, %c0_27, %c0_28], %52 {strides = array<i32>} : memref<1x4x8x128xf32, #tpu.memory_space<vmem>>, vector<1x1x8x128xf32>,
    %c0_29 = arith.constant 0 : index
    %c2 = arith.constant 2 : index
    %c0_30 = arith.constant 0 : index
    %c0_31 = arith.constant 0 : index
    %53 = vector.load %arg4[%c0_29, %c2, %c0_30, %c0_31] : memref<1x4x8x128xf32, #tpu.memory_space<vmem>>, vector<1x1x8x128xf32>
    %54 = vector.shape_cast %53 : vector<1x1x8x128xf32> to vector<8x128xf32>
    %55 = arith.addf %54, %37 : vector<8x128xf32>
    %c0_32 = arith.constant 0 : index
    %c2_33 = arith.constant 2 : index
    %c0_34 = arith.constant 0 : index
    %c0_35 = arith.constant 0 : index
    %56 = vector.load %arg4[%c0_32, %c2_33, %c0_34, %c0_35] : memref<1x4x8x128xf32, #tpu.memory_space<vmem>>, vector<1x1x8x128xf32>
    %57 = vector.shape_cast %56 : vector<1x1x8x128xf32> to vector<8x128xf32>
    %58 = vector.shape_cast %55 : vector<8x128xf32> to vector<1x1x8x128xf32>
    tpu.vector_store %arg4[%c0_32, %c2_33, %c0_34, %c0_35], %58 {strides = array<i32>} : memref<1x4x8x128xf32, #tpu.memory_space<vmem>>, vector<1x1x8x128xf32>,
    %c0_36 = arith.constant 0 : index
    %c3 = arith.constant 3 : index
    %c0_37 = arith.constant 0 : index
    %c0_38 = arith.constant 0 : index
    %59 = vector.load %arg4[%c0_36, %c3, %c0_37, %c0_38] : memref<1x4x8x128xf32, #tpu.memory_space<vmem>>, vector<1x1x8x128xf32>
    %60 = vector.shape_cast %59 : vector<1x1x8x128xf32> to vector<8x128xf32>
    %61 = arith.addf %60, %40 : vector<8x128xf32>
    %c0_39 = arith.constant 0 : index
    %c3_40 = arith.constant 3 : index
    %c0_41 = arith.constant 0 : index
    %c0_42 = arith.constant 0 : index
    %62 = vector.load %arg4[%c0_39, %c3_40, %c0_41, %c0_42] : memref<1x4x8x128xf32, #tpu.memory_space<vmem>>, vector<1x1x8x128xf32>
    %63 = vector.shape_cast %62 : vector<1x1x8x128xf32> to vector<8x128xf32>
    %64 = vector.shape_cast %61 : vector<8x128xf32> to vector<1x1x8x128xf32>
    tpu.vector_store %arg4[%c0_39, %c3_40, %c0_41, %c0_42], %64 {strides = array<i32>} : memref<1x4x8x128xf32, #tpu.memory_space<vmem>>, vector<1x1x8x128xf32>,
    return
  }
  func.func @transform_0(%arg0: i32, %arg1: i32) -> (i32, i32, i32) {
    %c0_i32 = arith.constant 0 : i32
    %c0_i32_0 = arith.constant 0 : i32
    return %arg0, %arg1, %c0_i32 : i32, i32, i32
  }
  func.func @transform_1(%arg0: i32, %arg1: i32) -> (i32, i32, i32) {
    %c0_i32 = arith.constant 0 : i32
    %c0_i32_0 = arith.constant 0 : i32
    return %arg0, %arg1, %c0_i32 : i32, i32, i32
  }
  func.func @transform_2(%arg0: i32, %arg1: i32) -> (i32, i32, i32, i32) {
    %c0_i32 = arith.constant 0 : i32
    %c0_i32_0 = arith.constant 0 : i32
    %c0_i32_1 = arith.constant 0 : i32
    %c0_i32_2 = arith.constant 0 : i32
    return %arg0, %c0_i32, %c0_i32_0, %c0_i32_1 : i32, i32, i32, i32
  }
}

</mosaic_0001>

<bundles_post_ra>
// kernel: tpu_custom_call.1
= control target key start
LH: loop header
LB: loop body
LE: loop exit
PB: predicated region body
PF: predicated region fallthrough
CT: control target
= control target key end

     0   :  { %7 = vsyncpa [#allocation3], 0  ;;  %s270_s0 = inlined_call_operand.hbm [shape: f32[1,16,128], index: 0, kind: input, shape index: {}]   ;;  %s271_s1 = inlined_call_operand.hbm [shape: f32[1,16,128], index: 1, kind: input, shape index: {}]   ;;  %s272_s2 = inlined_call_operand.hbm [shape: f32[1,4,8,128], index: 2, kind: output, shape index: {}]  }
   0x1   :  { %8 = vsyncpa [#allocation6], 0 }
   0x2   :  { %9 = vsyncpa [#allocation4], 0  ;;  %s205_s9 = smov [#allocation2]   ;;  %s133_s13 = scalar_lea.hbm %s270_s0, 256 }
   0x3   :  { %s15_s10 = sshll.u32 %s205_s9, 4  ;;  %p134_p0 = scmp.ne.s32.totalorder %s270_s0, %s133_s13  ;;  %s16_s10 = int_to_ptr.vmem [resolvable:$true] %s15_s10 }
   0x4   :  { %p137_p1 = scmp.lt.u32.totalorder %s133_s13, %s270_s0 }
   0x6   :  { %p139_p2 = pnand %p137_p1, %p134_p0 }
   0x8   :  { %142 = shalt.err (!%p139_p2)
}
   0x9   :  { %s143_s18 = scalar_lea.vmem %s16_s10, 256  ;;  %p148_p4 = scmp.lt.s32.totalorder %s16_s10, %s16_s10 }
   0xa   :  { %p144_p3 = scmp.ne.s32.totalorder %s16_s10, %s143_s18  ;;  %p149_p5 = scmp.lt.s32.totalorder %s143_s18, %s143_s18 }
   0xc   :  { %p150_p6 = por %p149_p5, %p148_p4 }
   0xe   :  { %p151_p7 = pnand %p150_p6, %p144_p3 }
  0x10   :  { %154 = shalt.err (!%p151_p7)
}
  0x11   :  { %s206_s19 = smov 128   ;;  %s207_s20 = smov 8  }
  0x12   :  { %21 = dma.hbm_to_vmem [thread:$0]  %s270_s0, 256, %s16_s10, [#allocation3], %s206_s19, %s206_s19, %s207_s20  }
  0x13   :  { %s208_s23 = smov [#allocation5]   ;;  %s155_s27 = scalar_lea.hbm %s271_s1, 256 }
  0x14   :  { %s27_s24 = sshll.u32 %s208_s23, 4  ;;  %p156_p8 = scmp.ne.s32.totalorder %s271_s1, %s155_s27  ;;  %s28_s24 = int_to_ptr.vmem [resolvable:$true] %s27_s24 }
  0x15   :  { %p159_p9 = scmp.lt.u32.totalorder %s155_s27, %s271_s1 }
  0x17   :  { %p161_p10 = pnand %p159_p9, %p156_p8 }
  0x19   :  { %164 = shalt.err (!%p161_p10)
}
  0x1a   :  { %s165_s4 = scalar_lea.vmem %s28_s24, 256  ;;  %p170_p12 = scmp.lt.s32.totalorder %s28_s24, %s28_s24 }
  0x1b   :  { %p166_p11 = scmp.ne.s32.totalorder %s28_s24, %s165_s4  ;;  %p171_p13 = scmp.lt.s32.totalorder %s165_s4, %s165_s4 }
  0x1d   :  { %p172_p0 = por %p171_p13, %p170_p12 }
  0x1f   :  { %p173_p1 = pnand %p172_p0, %p166_p11 }
  0x21   :  { %176 = shalt.err (!%p173_p1)
}
  0x22   :  { %33 = dma.hbm_to_vmem [thread:$0]  %s271_s1, 256, %s28_s24, [#allocation6], %s206_s19, %s206_s19, %s207_s20  }
  0x23   :  { %199 = dma.done.wait [#allocation3], 256  }
  0x24   :  { %200 = vsyncadd [#allocation3], 4294967040 }
  0x25   :  { %201 = dma.done.wait [#allocation6], 256  }
  0x26   :  { %202 = vsyncadd [#allocation6], 4294967040  ;;  %v48_v0 = vld [vmem:[#allocation2] sm:$0xff]  ;;  %v49_v1 = vld [vmem:[#allocation2 + $0x8] sm:$0xff]  ;;  %s209_s1 = smov [#allocation7]  }
  0x27   :  { %v50_v2 = vld [vmem:[#allocation5] sm:$0xff]  ;;  %v51_v3 = vld [vmem:[#allocation5 + $0x8] sm:$0xff]  ;;  %v52_v4 = vmul.f32 0.5, %v48_v0  ;;  %v53_v5 = vmul.f32 0.5, %v49_v1  ;;  %v60_v21 = vmax.f32 %v48_v0, 0.0  ;;  %v61_v23 = vmax.f32 %v49_v1, 0.0 }
  0x28   :  { %v82_v6 = vadd.f32 %v51_v3, %v50_v2  ;;  %v62_v22 = vmul.f32 %v50_v2, %v48_v0  ;;  %v63_v24 = vmul.f32 %v51_v3, %v49_v1  ;;  %s106_s6 = sshll.u32 %s209_s1, 4  ;;  %s107_s6 = int_to_ptr.vmem [resolvable:$true] %s106_s6 }
  0x29   :  { %125 = vtanh.f32 %v52_v4  ;;  %s177_s7 = scalar_lea.vmem %s107_s6, 512  ;;  %p182_p3 = scmp.lt.s32.totalorder %s107_s6, %s107_s6 }
  0x2a   :  { %127 = vtanh.f32 %v53_v5  ;;  %96 = vst [vmem:[#allocation7 + $0x10] sm:$0xff] %v82_v6  ;;  %v64_v25 = vsub.f32 %v60_v21, %v62_v22  ;;  %v65_v27 = vsub.f32 %v61_v23, %v63_v24  ;;  %p178_p2 = scmp.ne.s32.totalorder %s107_s6, %s177_s7  ;;  %p183_p4 = scmp.lt.s32.totalorder %s177_s7, %s177_s7 }
  0x2c   :  { %p184_p5 = por %p183_p4, %p182_p3 }
  0x2e   :  { %p185_p6 = pnand %p184_p5, %p178_p2 }
  0x33   :  { %v126_v7 = vpop.eup %125 }
  0x34   :  { %v128_v8 = vpop.eup %127  ;;  %v56_v9 = vmul.f32 0.5, %v126_v7 }
  0x35   :  { %v57_v10 = vmul.f32 0.5, %v128_v8 }
  0x36   :  { %v58_v11 = vadd.f32 0.5, %v56_v9  ;;  %v66_v12 = vand.u32 2147483647, %v56_v9 }
  0x37   :  { %v59_v13 = vadd.f32 0.5, %v57_v10  ;;  %v67_v14 = vand.u32 2147483647, %v57_v10 }
  0x38   :  { %v76_v15 = vmul.f32 %v58_v11, %v50_v2  ;;  %v68_v16 = vadd.f32 0.5, %v66_v12 }
  0x39   :  { %v77_v17 = vmul.f32 %v59_v13, %v51_v3  ;;  %v80_v18 = vadd.f32 %v59_v13, %v58_v11  ;;  %v69_v19 = vadd.f32 0.5, %v67_v14 }
  0x3a   :  { %129 = vlog2.f32 %v68_v16 }
  0x3b   :  { %v78_v20 = vadd.f32 %v77_v17, %v76_v15  ;;  %131 = vlog2.f32 %v69_v19  ;;  %92 = vst [vmem:[#allocation7 + $0x8] sm:$0xff] %v80_v18 }
  0x3d   :  { %88 = vst [vmem:[#allocation7] sm:$0xff] %v78_v20 }
  0x44   :  { %v130_v26 = vpop.eup %129 }
  0x45   :  { %v132_v28 = vpop.eup %131  ;;  %v71_v29 = vmul.f32 0.6931472, %v130_v26 }
  0x46   :  { %v73_v30 = vmul.f32 0.6931472, %v132_v28 }
  0x47   :  { %v74_v31 = vsub.f32 %v64_v25, %v71_v29 }
  0x48   :  { %v75_v32 = vsub.f32 %v65_v27, %v73_v30 }
  0x4a   :  { %v84_v33 = vadd.f32 %v75_v32, %v74_v31 }
  0x4c   :  { %100 = vst [vmem:[#allocation7 + $0x18] sm:$0xff] %v84_v33 }
  0x4d   :  { %188 = shalt.err (!%p185_p6)
}
  0x4e   :  { %s189_s10 = scalar_lea.hbm %s272_s2, 512 }
  0x4f   :  { %p190_p7 = scmp.ne.s32.totalorder %s272_s2, %s189_s10  ;;  %p193_p8 = scmp.lt.u32.totalorder %s189_s10, %s272_s2 }
  0x51   :  { %p195_p9 = pnand %p193_p8, %p190_p7 }
  0x53   :  { %198 = shalt.err (!%p195_p9)
}
  0x54   :  { %112 = dma.vmem_to_hbm [thread:$0]  %s107_s6, 512, %s272_s2, [#allocation4], %s206_s19, %s206_s19, %s207_s20  }
  0x55   :  { %203 = dma.done.wait [#allocation4], 512  }
  0x56   :  { %204 = vsyncadd [#allocation4], 4294966784 }
  0x57   :  { %116 = vsyncpa [#allocation3], 1 }
  0x58   :  { %117 = vsyncpa [#allocation6], 1 }
  0x59   :  { %118 = vsyncpa [#allocation4], 1 }

</bundles_post_ra>
